<compile_context>
chip_gen: v7x
topology: tpu7x:2x2x1
jax: 0.10.0
libtpu: 0.0.40
codegen_flags: <defaults>
</compile_context>

<pallas_src>
import jax
import jax.numpy as jnp
from jax.experimental import pallas as pl
from jax.experimental.pallas import tpu as pltpu


def _round_up(v, m):
    return ((v + m - 1) // m) * m


def _cdiv(a, b):
    return (a + b - 1) // b


def _se_kernel(x_ref, xse_ref, w1_ref, b1_ref, w2_ref, b2_ref, o_ref):
    # mlp_reduce + ReLU (f32 accumulation on the MXU). Operands are cast to
    # the (possibly narrower) weight dtype so bf16 weights get the fast path.
    h = jnp.dot(xse_ref[...].astype(w1_ref.dtype), w1_ref[...],
                preferred_element_type=jnp.float32)
    h = jnp.maximum(h + b1_ref[...].astype(jnp.float32), 0.0)
    # mlp_expand + sigmoid gate
    g = jnp.dot(h.astype(w2_ref.dtype), w2_ref[...],
                preferred_element_type=jnp.float32)
    gate = jax.nn.sigmoid(g + b2_ref[...].astype(jnp.float32))
    # elementwise gating in f32, cast to output dtype at the end
    o_ref[...] = (x_ref[...].astype(jnp.float32) * gate).astype(o_ref.dtype)


def prepare_se_params(w1, b1, w2, b2, weights_dtype=None):
    """One-time weight prep (hoist/cache outside the hot path):
    transpose PyTorch (out, in) -> (in, out) so the kernel does x @ W, and
    optionally cast the weights (bf16 halves the resident VMEM footprint)."""
    if weights_dtype is not None:
        w1 = w1.astype(weights_dtype)
        w2 = w2.astype(weights_dtype)
    C = w1.shape[0]
    return w1.T, b1.reshape(1, C), w2.T, b2.reshape(1, C)


def se_layer_apply(x, x_se, w1_t, b1_2d, w2_t, b2_2d, *, tm_max=4096):
    """x, x_se: [..., C] (same shape). w1_t, w2_t: (C, C) in (in, out) layout.
    b1_2d, b2_2d: (1, C)."""
    # TODO(synk): if x_se is a pooled [B, 1, ..., C] tensor broadcast over
    # spatial positions, compute the gate once per image on the small tensor
    # and only stream x + the per-image gate row here (big HBM/MXU win).
    assert x.shape == x_se.shape, "kernel streams x and x_se row-for-row"

    orig_shape = x.shape
    C = orig_shape[-1]
    x2 = x.reshape(-1, C)
    xse2 = x_se.reshape(-1, C)
    M = x2.shape[0]

    itemsize = jnp.dtype(x.dtype).itemsize
    w_itemsize = jnp.dtype(w1_t.dtype).itemsize
    sublane = 8 * max(1, 4 // itemsize)          # 8 rows f32, 16 bf16
    lane = 128
    Cp = _round_up(C, lane)                      # internal VMEM lane padding (for sizing only)

    # --- VMEM budget (accounts for resident weights; device-aware) ---------
    try:
        vmem_cap = int(pltpu.get_tpu_info().vmem_capacity_bytes)
    except Exception:
        vmem_cap = 64 * 1024 * 1024              # conservative: v7x per-TC physical
    vmem_target = min(vmem_cap * 7 // 10, 100 * 1024 * 1024)

    # Resident weights + biases, conservatively budgeted as double-buffered.
    weight_bytes = 2 * 2 * _round_up(C, 8) * Cp * w_itemsize
    bias_bytes = 2 * 2 * sublane * Cp * 4
    per_row_stream = 3 * 2 * Cp * itemsize       # x, x_se, out; double-buffered

    stream_budget = max(vmem_target - weight_bytes - bias_bytes,
                        sublane * per_row_stream)
    tm_budget = max(sublane, (stream_budget // per_row_stream) // sublane * sublane)
    # Keep >= 8 grid steps so the "parallel" M axis feeds both v7x TensorCores.
    tm_parallel_cap = _round_up(max(1, _cdiv(M, 8)), sublane)
    TM = max(sublane, min(tm_max, tm_budget, tm_parallel_cap))

    grid = (_cdiv(M, TM),)

    needed_vmem = TM * per_row_stream + weight_bytes + bias_bytes
    vmem_limit = int(min(max(needed_vmem + (4 << 20), 16 << 20), 112 << 20))

    # Streamed (TM, C) row tiles at native channel width (no lane padding in
    # HBM); weights/biases are full-extent blocks kept resident via a
    # constant index_map.
    row_spec = pl.BlockSpec((TM, C), lambda i: (i, 0))
    w_spec = pl.BlockSpec((C, C), lambda i: (0, 0))
    b_spec = pl.BlockSpec((1, C), lambda i: (0, 0))

    cost = pl.CostEstimate(
        flops=int(4 * M * C * C),                    # two M x C x C matmuls
        transcendentals=int(M * C),                  # sigmoid
        bytes_accessed=int(3 * M * C * itemsize      # x, x_se, out
                           + 2 * C * C * w_itemsize  # weights
                           + 2 * C * 4),             # biases
    )

    out = pl.pallas_call(
        _se_kernel,
        out_shape=jax.ShapeDtypeStruct((M, C), x.dtype),
        grid=grid,
        in_specs=[
            row_spec,   # x
            row_spec,   # x_se
            w_spec,     # W1^T (resident)
            b_spec,     # b1   (resident)
            w_spec,     # W2^T (resident)
            b_spec,     # b2   (resident)
        ],
        out_specs=row_spec,
        compiler_params=pltpu.CompilerParams(
            dimension_semantics=("parallel",),
            vmem_limit_bytes=vmem_limit,
        ),
        cost_estimate=cost,
    )(x2, xse2, w1_t, b1_2d, w2_t, b2_2d)

    return out.reshape(orig_shape)


def se_layer(x, x_se, w1, b1, w2, b2, *, weights_dtype=None, tm_max=4096):
    """Convenience wrapper taking PyTorch-convention (out, in) weights.
    For repeated calls, hoist prepare_se_params() out of the hot path."""
    params = prepare_se_params(w1, b1, w2, b2, weights_dtype=weights_dtype)
    return se_layer_apply(x, x_se, *params, tm_max=tm_max)


def _reference(x, x_se, w1, b1, w2, b2):
    h = x_se @ w1.T + b1
    h = jnp.maximum(h, 0.0)
    g = h @ w2.T + b2
    return x * jax.nn.sigmoid(g)


if __name__ == "__main__":
    B, N, C = 2, 8, 32
    key = jax.random.PRNGKey(0)
    k_x, k_se, k_w1, k_b1, k_w2, k_b2 = jax.random.split(key, 6)

    x = jax.random.normal(k_x, (B, N, C), dtype=jnp.float32)
    x_se = jax.random.normal(k_se, (B, N, C), dtype=jnp.float32)

    # deterministic parameter init (shapes from nn.Linear(channels, channels))
    w1 = jax.random.normal(k_w1, (C, C), dtype=jnp.float32) * 0.1
    b1 = jax.random.normal(k_b1, (C,), dtype=jnp.float32) * 0.1
    w2 = jax.random.normal(k_w2, (C, C), dtype=jnp.float32) * 0.1
    b2 = jax.random.normal(k_b2, (C,), dtype=jnp.float32) * 0.1

    out = se_layer(x, x_se, w1, b1, w2, b2)
    jax.block_until_ready(out)

    ref = _reference(x, x_se, w1, b1, w2, b2)
    assert out.shape == ref.shape
    assert jnp.allclose(out, ref, atol=1e-5, rtol=1e-5)

    print("KERNEL_OK")
</pallas_src>

<mosaic_0001>
module attributes {stable_mosaic.version = 11 : i64} {
  func.func @_se_kernel(%arg0: i32, %arg1: memref<8x32xf32, #tpu.memory_space<vmem>>, %arg2: memref<8x32xf32, #tpu.memory_space<vmem>>, %arg3: memref<32x32xf32, #tpu.memory_space<vmem>>, %arg4: memref<1x32xf32, #tpu.memory_space<vmem>>, %arg5: memref<32x32xf32, #tpu.memory_space<vmem>>, %arg6: memref<1x32xf32, #tpu.memory_space<vmem>>, %arg7: memref<8x32xf32, #tpu.memory_space<vmem>>) attributes {dimension_semantics = [#tpu.dimension_semantics<parallel>], iteration_bounds = array<i64: 2>, scalar_prefetch = 0 : i64, scratch_operands = 0 : i64, tpu.core_type = #tpu.core_type<tc>, window_params = [{transform_indices = @transform_0, window_bounds = array<i64: 8, 32>}, {transform_indices = @transform_1, window_bounds = array<i64: 8, 32>}, {pipeline_mode = #tpu.pipeline_mode<synchronous>, transform_indices = @transform_2, window_bounds = array<i64: 32, 32>}, {pipeline_mode = #tpu.pipeline_mode<synchronous>, transform_indices = @transform_3, window_bounds = array<i64: 1, 32>}, {pipeline_mode = #tpu.pipeline_mode<synchronous>, transform_indices = @transform_4, window_bounds = array<i64: 32, 32>}, {pipeline_mode = #tpu.pipeline_mode<synchronous>, transform_indices = @transform_5, window_bounds = array<i64: 1, 32>}, {transform_indices = @transform_6, window_bounds = array<i64: 8, 32>}]} {
    %c0 = arith.constant 0 : index
    %c0_0 = arith.constant 0 : index
    %0 = vector.load %arg2[%c0, %c0_0] : memref<8x32xf32, #tpu.memory_space<vmem>>, vector<8x32xf32>
    %c0_1 = arith.constant 0 : index
    %c0_2 = arith.constant 0 : index
    %1 = vector.load %arg3[%c0_1, %c0_2] : memref<32x32xf32, #tpu.memory_space<vmem>>, vector<32x32xf32>
    %cst = arith.constant dense<0.000000e+00> : vector<8x32xf32>
    %2 = tpu.matmul %0, %1, %cst {dimension_numbers = #tpu.dot_dimension_numbers<[1], [0], [0], [1], [0, 0, 1, 1], [], []>} : vector<8x32xf32>, vector<32x32xf32>, vector<8x32xf32> -> vector<8x32xf32>
    %c0_3 = arith.constant 0 : index
    %c0_4 = arith.constant 0 : index
    %3 = vector.load %arg4[%c0_3, %c0_4] : memref<1x32xf32, #tpu.memory_space<vmem>>, vector<1x32xf32>
    %4 = vector.broadcast %3 : vector<1x32xf32> to vector<8x32xf32>
    %5 = arith.addf %2, %4 : vector<8x32xf32>
    %cst_5 = arith.constant 0.000000e+00 : f32
    %6 = vector.broadcast %cst_5 : f32 to vector<8x32xf32>
    %7 = arith.maximumf %5, %6 : vector<8x32xf32>
    %c0_6 = arith.constant 0 : index
    %c0_7 = arith.constant 0 : index
    %8 = vector.load %arg5[%c0_6, %c0_7] : memref<32x32xf32, #tpu.memory_space<vmem>>, vector<32x32xf32>
    %cst_8 = arith.constant dense<0.000000e+00> : vector<8x32xf32>
    %9 = tpu.matmul %7, %8, %cst_8 {dimension_numbers = #tpu.dot_dimension_numbers<[1], [0], [0], [1], [0, 0, 1, 1], [], []>} : vector<8x32xf32>, vector<32x32xf32>, vector<8x32xf32> -> vector<8x32xf32>
    %c0_9 = arith.constant 0 : index
    %c0_10 = arith.constant 0 : index
    %10 = vector.load %arg6[%c0_9, %c0_10] : memref<1x32xf32, #tpu.memory_space<vmem>>, vector<1x32xf32>
    %11 = vector.broadcast %10 : vector<1x32xf32> to vector<8x32xf32>
    %12 = arith.addf %9, %11 : vector<8x32xf32>
    %13 = arith.negf %12 : vector<8x32xf32>
    %14 = math.exp %13 : vector<8x32xf32>
    %cst_11 = arith.constant 1.000000e+00 : f32
    %15 = vector.broadcast %cst_11 : f32 to vector<8x32xf32>
    %16 = arith.addf %15, %14 : vector<8x32xf32>
    %17 = arith.divf %15, %16 : vector<8x32xf32>
    %c0_12 = arith.constant 0 : index
    %c0_13 = arith.constant 0 : index
    %18 = vector.load %arg1[%c0_12, %c0_13] : memref<8x32xf32, #tpu.memory_space<vmem>>, vector<8x32xf32>
    %19 = arith.mulf %18, %17 : vector<8x32xf32>
    %c0_14 = arith.constant 0 : index
    %c0_15 = arith.constant 0 : index
    %20 = vector.load %arg7[%c0_14, %c0_15] : memref<8x32xf32, #tpu.memory_space<vmem>>, vector<8x32xf32>
    tpu.vector_store %arg7[%c0_14, %c0_15], %19 {strides = array<i32>} : memref<8x32xf32, #tpu.memory_space<vmem>>, vector<8x32xf32>,
    return
  }
  func.func @transform_0(%arg0: i32) -> (i32, i32) {
    %c0_i32 = arith.constant 0 : i32
    %c0_i32_0 = arith.constant 0 : i32
    return %arg0, %c0_i32 : i32, i32
  }
  func.func @transform_1(%arg0: i32) -> (i32, i32) {
    %c0_i32 = arith.constant 0 : i32
    %c0_i32_0 = arith.constant 0 : i32
    return %arg0, %c0_i32 : i32, i32
  }
  func.func @transform_2(%arg0: i32) -> (i32, i32) {
    %c0_i32 = arith.constant 0 : i32
    %c0_i32_0 = arith.constant 0 : i32
    %c0_i32_1 = arith.constant 0 : i32
    return %c0_i32, %c0_i32_0 : i32, i32
  }
  func.func @transform_3(%arg0: i32) -> (i32, i32) {
    %c0_i32 = arith.constant 0 : i32
    %c0_i32_0 = arith.constant 0 : i32
    %c0_i32_1 = arith.constant 0 : i32
    return %c0_i32, %c0_i32_0 : i32, i32
  }
  func.func @transform_4(%arg0: i32) -> (i32, i32) {
    %c0_i32 = arith.constant 0 : i32
    %c0_i32_0 = arith.constant 0 : i32
    %c0_i32_1 = arith.constant 0 : i32
    return %c0_i32, %c0_i32_0 : i32, i32
  }
  func.func @transform_5(%arg0: i32) -> (i32, i32) {
    %c0_i32 = arith.constant 0 : i32
    %c0_i32_0 = arith.constant 0 : i32
    %c0_i32_1 = arith.constant 0 : i32
    return %c0_i32, %c0_i32_0 : i32, i32
  }
  func.func @transform_6(%arg0: i32) -> (i32, i32) {
    %c0_i32 = arith.constant 0 : i32
    %c0_i32_0 = arith.constant 0 : i32
    return %arg0, %c0_i32 : i32, i32
  }
}

</mosaic_0001>

<bundles_post_ra>
// kernel: tpu_custom_call.1
= control target key start
LH: loop header
LB: loop body
LE: loop exit
PB: predicated region body
PF: predicated region fallthrough
CT: control target
= control target key end

     0   :  { %s1314_s0 = inlined_call_operand.hbm [shape: f32[16,32], index: 0, kind: input, shape index: {}]   ;;  %s1315_s1 = inlined_call_operand.hbm [shape: f32[16,32], index: 1, kind: input, shape index: {}]   ;;  %s1316_s2 = inlined_call_operand.hbm [shape: f32[32,32], index: 2, kind: input, shape index: {}]   ;;  %s1317_s3 = inlined_call_operand.vmem [shape: f32[1,32], index: 3, kind: input, shape index: {}]   ;;  %s1318_s4 = inlined_call_operand.hbm [shape: f32[32,32], index: 4, kind: input, shape index: {}]   ;;  %s1319_s5 = inlined_call_operand.vmem [shape: f32[1,32], index: 5, kind: input, shape index: {}]   ;;  %s1320_s6 = inlined_call_operand.hbm [shape: f32[16,32], index: 6, kind: output, shape index: {}]  }
   0x1   :  { %1325 = sst [smem:[#allocation17_spill]] %s1316_s2 }
   0x2   :  { %1326 = sst [smem:[#allocation18_spill]] %s1318_s4 }
   0x3   :  { %11 = vsyncpa [#allocation3], 0 }
   0x4   :  { %13 = vsyncpa [#allocation3 + $0x1], 0 }
   0x5   :  { %14 = vsyncpa [#allocation6], 0 }
   0x6   :  { %16 = vsyncpa [#allocation6 + $0x1], 0 }
   0x7   :  { %17 = vsyncpa [#allocation9], 0 }
   0x8   :  { %18 = vsyncpa [#allocation4], 0 }
   0x9   :  { %20 = vsyncpa [#allocation4 + $0x1], 0  ;;  %s1029_s21 = smov 0   ;;  %s1031_s22 = smov 0  }
   0xa   :  { %s1033_s23 = smov 0   ;;  %s1035_s24 = smov 0  }
   0xb LB: > { %s1050_s25 = sadd.s32 4294967295, %s982_s24   ;;  %s639_s26 = sadd.s32 4294967294, %s982_s24   ;;  %s982_s24 = sphi %s1035_s24, %s1350_s24   ;;  %s978_s23 = sphi %s1033_s23, %s1349_s23   ;;  %s974_s22 = sphi %s1031_s22, %s1348_s22   ;;  %s970_s21 = sphi %s1029_s21, %s1347_s21  }
   0xc   : > { %p46_p0 = scmp.ne.s32.totalorder %s974_s22, %s970_s21  ;;  %p1321_p1 = scmp.eq.s32.totalorder %s1050_s25, 0 }
   0xd   : > { %p186_p3 = scmp.eq.s32.totalorder %s639_s26, 1  ;;  %p640_p5 = scmp.ge.s32.totalorder %s982_s24, 1 }
   0xe   : > { %p1059_p4 = por %p1321_p1, %p46_p0  ;;  %p193_p7 = scmp.lt.s32.totalorder %s982_s24, 3 }
   0xf   : > { %p1064_p6 = por %p186_p3, %p46_p0  ;;  %s984_s30 = smov [#allocation7]  }
  0x10   : > { %s1327_s27 = scalar_select %p1059_p4, 1, 0 }
  0x11   : > { %s1328_s28 = scalar_select %p1064_p6, 1, 0 }
  0x12   : > { %p1069_p8 = pnand %p640_p5, %p193_p7  ;;  %s205_s7 = sshll.u32 %s984_s30, 4  ;;  %s1073_s7 = int_to_ptr.vmem [resolvable:$true] %s205_s7 }
  0x13   : > { %s985_s9 = smov [#allocation8]   ;;  %s1331_s2 = sld [smem:[#allocation17_spill]] }
  0x14   : > { %s1329_s29 = scalar_select %p1069_p8, 1, 0 }
  0x15   : > { %p721_p9 = pneg %p1069_p8  ;;  %s221_s10 = sshll.u32 %s985_s9, 4  ;;  %s1084_s10 = int_to_ptr.vmem [resolvable:$true] %s221_s10 }
  0x17   : > { %p1080_p11 = pnand %p721_p9, %p1321_p1 }
  0x19   : > { %s788_s13 = scalar_lea.hbm %s1331_s2, 512  ;;  %p790_p13 = pneg %p1080_p11 }
  0x1a   : > { %p789_p12 = scmp.ne.s32.totalorder %s1331_s2, %s788_s13  ;;  %p795_p5 = scmp.lt.u32.totalorder %s788_s13, %s1331_s2 }
  0x1c   : > { %p791_p0 = pnand %p790_p13, %p789_p12 }
  0x1e   : > { %p792_p3 = pneg %p791_p0 }
  0x20   : > { %p797_p7 = pnand %p795_p5, %p792_p3 }
  0x22   : > { %800 = shalt.err (!%p797_p7)
}
  0x23   : > { %s801_s18 = scalar_lea.vmem %s1073_s7, 512  ;;  %p809_p2 = scmp.lt.s32.totalorder %s1073_s7, %s1073_s7 }
  0x24   : > { %p802_p9 = scmp.ne.s32.totalorder %s1073_s7, %s801_s18  ;;  %p810_p12 = scmp.lt.s32.totalorder %s801_s18, %s801_s18 }
  0x26   : > { %p804_p10 = pnand %p802_p9, %p790_p13  ;;  %p811_p0 = por %p810_p12, %p809_p2 }
  0x28   : > { %p805_p1 = pneg %p804_p10 }
  0x2a   : > { %p812_p6 = pnand %p811_p0, %p805_p1 }
  0x2c   : > { %815 = shalt.err (!%p812_p6)
}
  0x2d   : > { %s986_s19 = smov 128   ;;  %s987_s20 = smov 8  }
  0x2e   : > { %724 = dma.hbm_to_vmem [thread:$0]  (!%p1080_p11), %s1331_s2, 512, %s1073_s7, [#allocation6], %s986_s19, %s986_s19, %s987_s20  }
  0x2f   : > { %s1332_s4 = sld [smem:[#allocation18_spill]] }
  0x35   : > { %s816_s12 = scalar_lea.hbm %s1332_s4, 512 }
  0x36   : > { %p817_p2 = scmp.ne.s32.totalorder %s1332_s4, %s816_s12  ;;  %p823_p10 = scmp.lt.u32.totalorder %s816_s12, %s1332_s4 }
  0x38   : > { %p819_p1 = pnand %p817_p2, %p790_p13 }
  0x3a   : > { %p820_p6 = pneg %p819_p1 }
  0x3c   : > { %p825_p3 = pnand %p823_p10, %p820_p6 }
  0x3e   : > { %828 = shalt.err (!%p825_p3)
}
  0x3f   : > { %s829_s7 = scalar_lea.vmem %s1084_s10, 512  ;;  %p837_p12 = scmp.lt.s32.totalorder %s1084_s10, %s1084_s10 }
  0x40   : > { %p830_p5 = scmp.ne.s32.totalorder %s1084_s10, %s829_s7  ;;  %p838_p0 = scmp.lt.s32.totalorder %s829_s7, %s829_s7 }
  0x42   : > { %p832_p7 = pnand %p830_p5, %p790_p13  ;;  %p839_p2 = por %p838_p0, %p837_p12 }
  0x44   : > { %p833_p9 = pneg %p832_p7 }
  0x46   : > { %p840_p1 = pnand %p839_p2, %p833_p9 }
  0x48   : > { %843 = shalt.err (!%p840_p1)
}
  0x49   : > { %727 = dma.hbm_to_vmem [thread:$0]  (!%p1080_p11), %s1332_s4, 512, %s1084_s10, [#allocation9], %s986_s19, %s986_s19, %s987_s20  }
  0x4a   : > { %s1139_s26 = sadd.s32 1, %s982_s24   ;;  %s33_s8 = sadd.s32 1, %s978_s23 }
  0x4b   : > { %s30_s30 = ssub.s32 %s982_s24, %s1139_s26  ;;  %p40_p13 = scmp.ne.s32.totalorder %s978_s23, %s974_s22 }
  0x4c   : > { %p31_p6 = scmp.eq.s32.totalorder %s30_s30, 0  ;;  %p41_p10 = scmp.eq.s32.totalorder %s982_s24, 0 }
  0x4d   : > { %p1333_p3 = scmp.eq.s32.totalorder %s1050_s25, 1  ;;  %p741_p7 = scmp.lt.s32.totalorder %s982_s24, 2 }
  0x4e   : > { %s1155_s11 = scalar_select %p31_p6, %s978_s23, %s33_s8  }
  0x4f   : > { %p1149_p5 = por %p1333_p3, %p40_p13  ;;  %p42_p9 = por %p41_p10, %p40_p13 }
  0x50   : > { %1335 = sst [smem:[#allocation16_spill]] %s1155_s11  ;;  %s238_s12 = sand.u32 1, %s978_s23  }
  0x51   : > { %s1334_s9 = scalar_select %p1149_p5, 1, 0 }
  0x52   : > { %s1158_s10 = sshll.u32 %s238_s12, 3  ;;  %s645_s19 = sshll.u32 %s982_s24, 7 }
  0x53   : > { %s1164_s14 = scalar_lea.hbm %s1314_s0, %s645_s19  ;;  %s242_s15 = scalar_lea.vmem [#allocation2], %s1158_s10 }
  0x54   : > { %s249_s16 = sshll.u32 %s242_s15, 4  ;;  %p1169_p11 = pnand %p741_p7, %p42_p9  ;;  %s1167_s16 = int_to_ptr.vmem [resolvable:$true] %s249_s16 }
  0x55   : > { %s1176_s8 = scalar_lea.hbm %s1315_s1, %s645_s19  ;;  %s256_s30 = sand.u32 1, %s982_s24  }
  0x56   : > { %s239_s20 = scalar_lea.sflag [#allocation3], %s238_s12  ;;  %s844_s13 = scalar_lea.hbm %s1164_s14, 128 }
  0x57   : > { %p845_p12 = scmp.ne.s32.totalorder %s1164_s14, %s844_s13  ;;  %p846_p0 = pneg %p1169_p11 }
  0x58   : > { %s849_s4 = scalar_lea.hbm %s1314_s0, 256  ;;  %p850_p13 = scmp.lt.u32.totalorder %s1164_s14, %s1314_s0 }
  0x59   : > { %p847_p2 = pnand %p846_p0, %p845_p12  ;;  %p851_p6 = scmp.lt.u32.totalorder %s849_s4, %s844_s13 }
  0x5a   : > { %p853_p3 = scmp.lt.u32.totalorder %s844_s13, %s1164_s14 }
  0x5b   : > { %p848_p1 = pneg %p847_p2  ;;  %p852_p10 = por %p851_p6, %p850_p13 }
  0x5d   : > { %p854_p7 = por %p853_p3, %p852_p10 }
  0x5f   : > { %p855_p9 = pnand %p854_p7, %p848_p1 }
  0x61   : > { %858 = shalt.err (!%p855_p9)
}
  0x62   : > { %s859_s12 = scalar_lea.vmem %s1167_s16, 128  ;;  %s988_s2 = smov [#allocation2]  }
  0x63   : > { %p860_p12 = scmp.ne.s32.totalorder %s1167_s16, %s859_s12  ;;  %s864_s19 = sshll.u32 %s988_s2, 4  ;;  %s865_s19 = int_to_ptr.vmem [resolvable:$false] %s864_s19 }
  0x64   : > { %s866_s11 = scalar_lea.vmem %s865_s19, 256  ;;  %p867_p4 = scmp.lt.s32.totalorder %s1167_s16, %s865_s19 }
  0x65   : > { %p862_p2 = pnand %p860_p12, %p846_p0  ;;  %p868_p13 = scmp.lt.s32.totalorder %s866_s11, %s859_s12 }
  0x67   : > { %p863_p5 = pneg %p862_p2  ;;  %p869_p6 = por %p868_p13, %p867_p4 }
  0x69   : > { %p870_p10 = pnand %p869_p6, %p863_p5 }
  0x6b   : > { %873 = shalt.err (!%p870_p10)
}
  0x6c   : > { %731 = dma.hbm_to_vmem [thread:$0]  (!%p1169_p11), %s1164_s14, 128, %s1167_s16, %s239_s20  }
  0x6d   : > { %s260_s4 = scalar_lea.vmem [#allocation5], %s1158_s10  ;;  %s257_s13 = scalar_lea.sflag [#allocation6], %s256_s30 }
  0x6e   : > { %s267_s18 = sshll.u32 %s260_s4, 4  ;;  %s874_s15 = scalar_lea.hbm %s1176_s8, 128  ;;  %s268_s18 = int_to_ptr.vmem [resolvable:$true] %s267_s18 }
  0x6f   : > { %p875_p4 = scmp.ne.s32.totalorder %s1176_s8, %s874_s15  ;;  %s879_s2 = scalar_lea.hbm %s1315_s1, 256 }
  0x70   : > { %p880_p3 = scmp.lt.u32.totalorder %s1176_s8, %s1315_s1  ;;  %p881_p7 = scmp.lt.u32.totalorder %s879_s2, %s874_s15 }
  0x71   : > { %p877_p5 = pnand %p875_p4, %p846_p0  ;;  %p883_p12 = scmp.lt.u32.totalorder %s874_s15, %s1176_s8 }
  0x72   : > { %p882_p9 = por %p881_p7, %p880_p3 }
  0x73   : > { %p878_p1 = pneg %p877_p5 }
  0x74   : > { %p884_p2 = por %p883_p12, %p882_p9 }
  0x76   : > { %p885_p13 = pnand %p884_p2, %p878_p1 }
  0x78   : > { %888 = shalt.err (!%p885_p13)
}
  0x79   : > { %s889_s10 = scalar_lea.vmem %s268_s18, 128  ;;  %s989_s14 = smov [#allocation5]  }
  0x7a   : > { %p890_p6 = scmp.ne.s32.totalorder %s268_s18, %s889_s10  ;;  %s894_s16 = sshll.u32 %s989_s14, 4  ;;  %s895_s16 = int_to_ptr.vmem [resolvable:$false] %s894_s16 }
  0x7b   : > { %s896_s30 = scalar_lea.vmem %s895_s16, 256  ;;  %p897_p5 = scmp.lt.s32.totalorder %s268_s18, %s895_s16 }
  0x7c   : > { %p892_p10 = pnand %p890_p6, %p846_p0  ;;  %p898_p8 = scmp.lt.s32.totalorder %s896_s30, %s889_s10 }
  0x7e   : > { %p893_p4 = pneg %p892_p10  ;;  %p899_p3 = por %p898_p8, %p897_p5 }
  0x80   : > { %p900_p7 = pnand %p899_p3, %p893_p4 }
  0x82   : > { %903 = shalt.err (!%p900_p7)
}
  0x83   : > { %734 = dma.hbm_to_vmem [thread:$0]  (!%p1169_p11), %s1176_s8, 128, %s268_s18, %s257_s13  }
  0x84   : > { %p1337_p1 = scmp.ne.s32.totalorder %s1329_s29, 0 }
  0x85   : > { %s1229_s20 = sand.u32 (!%p1337_p1), 1, %s974_s22   ;;  %p1338_p8 = scmp.ne.s32.totalorder (!%p1337_p1), %s1327_s27, 0 }
  0x86   : > { %276 = sbr.rel (%p1337_p1) target bundleno = 635 (0x27b), region = 44  ;;  %s1232_s4 = sshll.u32 (!%p1337_p1), %s1229_s20, 3 }
  0x87   : > { %s279_s15 = scalar_lea.sflag (!%p1337_p1), [#allocation3], %s1229_s20  ;;  %s282_s17 = scalar_lea.vmem (!%p1337_p1), [#allocation2], %s1232_s4 }
  0x8d   : > { %949 = dma.done.wait (%p1338_p8), %s279_s15, 128  }
  0x8e   : > { %951 = vsyncadd (%p1338_p8), %s279_s15, 4294967168  ;;  %s287_s29 = sand.u32 1, %s1050_s25   ;;  %s291_s8 = scalar_lea.vmem [#allocation5], %s1232_s4 }
  0x8f   : > { %s288_s7 = scalar_lea.sflag [#allocation6], %s287_s29 }
  0x90   : > { %953 = dma.done.wait (%p1338_p8), %s288_s7, 128  }
  0x91   : > { %955 = vsyncadd (%p1338_p8), %s288_s7, 4294967168  ;;  %p1339_p11 = scmp.eq.s32.totalorder %s1050_s25, 0 }
  0x93   : > { %957 = dma.done.wait (%p1339_p11), [#allocation6], 512   ;;  %p1340_p0 = pmov %p1339_p11 }
  0x95   : > { %959 = vsyncadd (%p1340_p0), [#allocation6], 4294966784  ;;  %p1341_p9 = pmov %p1340_p0 }
  0x96   : > { %p1342_p12 = pmov %p1340_p0 }
  0x97   : > { %961 = dma.done.wait (%p1341_p9), [#allocation9], 512  }
  0x98   : > { %963 = vsyncadd (%p1342_p12), [#allocation9], 4294966784  ;;  %v990_v0 = vmov 0.0|0.0   ;;  %vm991_vm0 = vmmov 0   ;;  %v992_v1 = vmov 0.0   ;;  %v334_v2 = vld [vmem:[#allocation7] sm:$0xff] }
  0x99   : > { %695 = vmatprep.subr.bf16.mxu0 %v990_v0  ;;  %681 = vmatprep.mubr.msk.f32.mxu0 %vm991_vm0, %v992_v1  ;;  %v335_v3 = vld [vmem:[#allocation7 + $0x8] sm:$0xff]  ;;  %v336_v4 = vld [vmem:[#allocation7 + $0x10] sm:$0xff]  ;;  %v337_v6 = vld [vmem:[#allocation7 + $0x18] sm:$0xff]  ;;  %vm345_vm1 = vcmask 261120   ;;  %s660_s2 = sshll.u32 %s1050_s25, 7  ;;  %s332_s19 = scalar_lea.vmem [#allocation10], %s1232_s4 }
  0x9a   : > { %701 = vmatprep.subr.bf16.mxu1 %v990_v0  ;;  %692 = vmatprep.mubr.msk.f32.mxu1 %vm991_vm0, %v992_v1  ;;  %v696_v5 = vpack.c.bf16 %v335_v3, %v334_v2  ;;  %v420_v7 = vld [vmem:[#allocation8] sm:$0xff]  ;;  %v421_v8 = vld [vmem:[#allocation8 + $0x8] sm:$0xff]  ;;  %v699_v9 = vpack.c.bf16 %v337_v6, %v336_v4  ;;  %v333_v11 = vld [vmem:[%s291_s8] sm:$0xff]  ;;  %s527_s11 = sshll.u32 %s332_s19, 4  ;;  %s1269_s16 = scalar_lea.hbm %s1320_s6, %s660_s2  ;;  %s1271_s11 = int_to_ptr.vmem [resolvable:$true] %s527_s11 }
  0x9b   : > { %v702_v10 = vpack.c.bf16 %v421_v8, %v420_v7  ;;  %v422_v12 = vld [vmem:[#allocation8 + $0x10] sm:$0xff]  ;;  %v423_v13 = vld [vmem:[#allocation8 + $0x18] sm:$0xff]  ;;  %v654_v15 = vld [vmem:[%s1317_s3] ss:$0 sm:$0xff]  ;;  %s514_s30 = scalar_lea.sflag [#allocation4], %s1229_s20  ;;  %s904_s15 = scalar_lea.vmem %s1271_s11, 128 }
  0x9c   : > { %697 = vmatpush3.bf16.msra.mxu0 %v696_v5  ;;  %v705_v14 = vpack.c.bf16 %v423_v13, %v422_v12  ;;  %v656_v20 = vld [vmem:[%s1319_s5] ss:$0 sm:$0xff]  ;;  %p905_p2 = scmp.ne.s32.totalorder %s1271_s11, %s904_s15  ;;  %p1343_p13 = scmp.ne.s32.totalorder %s1334_s9, 0 }
  0x9d   : > { %698 = vmatprep.subr.bf16.mxu0 %v990_v0  ;;  %703 = vmatpush3.bf16.msra.mxu1 %v702_v10  ;;  %v510_v27 = vld [vmem:[%s282_s17] sm:$0xff]  ;;  %s993_s25 = smov [#allocation10]  }
  0x9e   : > { %704 = vmatprep.subr.bf16.mxu1 %v990_v0  ;;  %p906_p6 = pnand %p905_p2, %p1343_p13  ;;  %s908_s4 = sshll.u32 %s993_s25, 4  ;;  %s909_s4 = int_to_ptr.vmem [resolvable:$false] %s908_s4 }
  0x9f   : > { %s910_s17 = scalar_lea.vmem %s909_s4, 256  ;;  %p911_p4 = scmp.lt.s32.totalorder %s1271_s11, %s909_s4 }
  0xa0   : > { %700 = vmatpush3.bf16.msra.mxu0 %v699_v9  ;;  %p907_p10 = pneg %p906_p6  ;;  %p912_p5 = scmp.lt.s32.totalorder %s910_s17, %s904_s15 }
  0xa1   : > { %706 = vmatpush3.bf16.msra.mxu1 %v705_v14 }
  0xa2   : > { %p913_p3 = por %p912_p5, %p911_p4 }
  0xa3   : > { %682 = vmatmul.mubr.msk.f32.vlgmr.msra.gmra.mrb[0].mxu0 %vm345_vm1, %v333_v11 }
  0xa4   : > { %p914_p7 = pnand %p913_p3, %p907_p10 }
 0x176   : > { %v415_v16 = vpop.f32.mrb[0].mxu0 }
 0x177   : > { %v416_v17 = vadd.f32 %v654_v15, %v415_v16  ;;  %v683_v18 = vpop.f32.mrb[1].mxu0 }
 0x179   : > { %v419_v19 = vmax.f32 %v416_v17, 0.0 }
 0x17b   : > { %693 = vmatmul.mubr.msk.f32.vlgmr.msra.gmra.mrb[0].mxu1 %vm345_vm1, %v419_v19 }
 0x24e   : > { %v500_v21 = vpop.f32.mrb[0].mxu1 }
 0x24f   : > { %v501_v22 = vadd.f32 %v656_v20, %v500_v21  ;;  %v694_v23 = vpop.f32.mrb[1].mxu1 }
 0x251   : > { %v658_v24 = vmul.f32 -1.442695, %v501_v22 }
 0x253   : > { %784 = vpow2.f32 %v658_v24 }
 0x25d   : > { %v785_v25 = vpop.eup %784 }
 0x25e   : > { %v507_v26 = vadd.f32 1.0, %v785_v25 }
 0x260   : > { %786 = vrcp.f32 %v507_v26 }
 0x26a   : > { %v787_v28 = vpop.eup %786 }
 0x26b   : > { %v511_v29 = vmul.f32 %v787_v28, %v510_v27 }
 0x26d   : > { %512 = vst.msk [vmem:[%s332_s19] sm:$0xff] %vm345_vm1, %v511_v29 }
 0x26e   : > { %917 = shalt.err (!%p914_p7)
}
 0x26f   : > { %s918_s20 = scalar_lea.hbm %s1269_s16, 128  ;;  %s922_s8 = scalar_lea.hbm %s1320_s6, 256 }
 0x270   : > { %p919_p1 = scmp.ne.s32.totalorder %s1269_s16, %s918_s20  ;;  %p923_p0 = scmp.lt.u32.totalorder %s1269_s16, %s1320_s6 }
 0x271   : > { %p924_p9 = scmp.lt.u32.totalorder %s922_s8, %s918_s20  ;;  %p926_p2 = scmp.lt.u32.totalorder %s918_s20, %s1269_s16 }
 0x272   : > { %p920_p8 = pnand %p919_p1, %p1343_p13 }
 0x273   : > { %p925_p12 = por %p924_p9, %p923_p0 }
 0x274   : > { %p921_p11 = pneg %p920_p8 }
 0x275   : > { %p927_p6 = por %p926_p2, %p925_p12 }
 0x277   : > { %p928_p10 = pnand %p927_p6, %p921_p11 }
 0x279   : > { %931 = shalt.err (!%p928_p10)
}
 0x27a   : > { %719 = dma.vmem_to_hbm [thread:$0]  (%p1343_p13), %s1271_s11, 128, %s1269_s16, %s514_s30  }
 0x27b PF: > { %s539_s13 = sand.u32 1, %s970_s21   ;;  %p1344_p4 = scmp.ne.s32.totalorder %s1328_s28, 0 }
 0x27c   : > { %p1345_p5 = scmp.ge.s32.totalorder %s982_s24, 2  ;;  %s540_s12 = scalar_lea.sflag [#allocation4], %s539_s13 }
 0x27e   : > { %p736_p3 = pnand %p1345_p5, %p1344_p4 }
 0x280   : > { %965 = dma.done.wait (!%p736_p3), %s540_s12, 128  }
 0x281   : > { %967 = vsyncadd (!%p736_p3), %s540_s12, 4294967168  ;;  %s1346_s2 = sld [smem:[#allocation16_spill]]  ;;  %p23_p7 = scmp.ge.s32.totalorder %s1139_s26, 4  }
 0x282   : > { %s1347_s21 = smov %s974_s22  ;;  %s1348_s22 = smov %s978_s23 }
 0x283   : > { %s1350_s24 = smov %s1139_s26  ;;  %25 = sbr.rel (!%p23_p7) target bundleno = 11 (0xb), region = 110 }
 0x287   : > { %s1349_s23 = smov %s1346_s2 }
 0x28a   :  { %545 = vsyncpa [#allocation3], 1 }
 0x28b   :  { %547 = vsyncpa [#allocation3 + $0x1], 1 }
 0x28c   :  { %548 = vsyncpa [#allocation6], 1 }
 0x28d   :  { %550 = vsyncpa [#allocation6 + $0x1], 1 }
 0x28e   :  { %551 = vsyncpa [#allocation9], 1 }
 0x28f   :  { %552 = vsyncpa [#allocation4], 1 }
 0x290   :  { %554 = vsyncpa [#allocation4 + $0x1], 1 }

</bundles_post_ra>
